<compile_context>
chip_gen: v7x
topology: tpu7x:2x2x1
jax: 0.10.0
libtpu: 0.0.40
codegen_flags: <defaults>
</compile_context>

<pallas_src>
import functools
import math

import jax
import jax.numpy as jnp
from jax.experimental import pallas as pl
from jax.experimental.pallas import tpu as pltpu


# ---------------------------------------------------------------------------
# Pass 1: fused Q/K/V projection + head split (+ Q pre-scaling).
# grid = (B, S // proj_tile); every row projected exactly once.
# ---------------------------------------------------------------------------
def _qkv_proj_kernel(num_heads, depth, scale,
                     xq_ref, xk_ref, xv_ref,
                     wq_ref, bq_ref, wk_ref, bk_ref, wv_ref, bv_ref,
                     qh_ref, kh_ref, vh_ref):
    t = xq_ref.shape[1]

    def project(x_ref, w_ref, b_ref, mult=None):
        # bf16 MXU inputs, f32 accumulation + f32 bias add.
        y = jnp.dot(x_ref[0], w_ref[...],
                    preferred_element_type=jnp.float32) + b_ref[...]
        if mult is not None:
            y = y * mult
        # One-time head split/relayout (was previously done per KV step).
        yh = y.astype(jnp.bfloat16).reshape(t, num_heads, depth)
        return yh.transpose(1, 0, 2)                     # (H, t, depth)

    qh_ref[0] = project(xq_ref, wq_ref, bq_ref, scale)   # Q pre-scaled
    kh_ref[0] = project(xk_ref, wk_ref, bk_ref)
    vh_ref[0] = project(xv_ref, wv_ref, bv_ref)


# ---------------------------------------------------------------------------
# Pass 2: flash attention over pre-projected heads + fused output projection.
# grid = (B, S // tq, S // tk) with online-softmax accumulators in VMEM scratch.
# ---------------------------------------------------------------------------
def _flash_attn_kernel(q_ref, k_ref, v_ref, wo_ref, bo_ref, out_ref,
                       m_sc, l_sc, acc_sc):
    ki = pl.program_id(2)
    nk = pl.num_programs(2)

    @pl.when(ki == 0)
    def _():
        m_sc[...] = jnp.full(m_sc.shape, -jnp.inf, m_sc.dtype)
        l_sc[...] = jnp.zeros(l_sc.shape, l_sc.dtype)
        acc_sc[...] = jnp.zeros(acc_sc.shape, acc_sc.dtype)

    q = q_ref[0]                                          # (H, TQ, depth) bf16, scaled
    k = k_ref[0]                                          # (H, TK, depth) bf16
    v = v_ref[0]                                          # (H, TK, depth) bf16

    # Head-batched scores (all heads in one MXU push), f32 accumulation.
    s = jnp.einsum("hqd,hkd->hqk", q, k, preferred_element_type=jnp.float32)
    # TODO(synk): optional `mask` argument of the PyTorch forward not wired up
    # (forward is exercised with mask=None); masking would be a jnp.where on `s`.

    m_prev = m_sc[...]
    m_new = jnp.maximum(m_prev, s.max(axis=-1, keepdims=True))
    alpha = jnp.exp(m_prev - m_new)
    p = jnp.exp(s - m_new)          # f32 exp (bf16 exp is a v6e/v7x-only option)
    l_sc[...] = alpha * l_sc[...] + p.sum(axis=-1, keepdims=True)
    acc_sc[...] = alpha * acc_sc[...] + jnp.einsum(
        "hqk,hkd->hqd", p.astype(jnp.bfloat16), v,
        preferred_element_type=jnp.float32)
    m_sc[...] = m_new

    @pl.when(ki == nk - 1)
    def _():
        num_heads, tq, depth = acc_sc.shape
        o = acc_sc[...] * pl.reciprocal(l_sc[...], approx=True)   # EUP, not VALU div
        merged = o.transpose(1, 0, 2).reshape(tq, num_heads * depth)
        out = jnp.dot(merged.astype(jnp.bfloat16), wo_ref[...],
                      preferred_element_type=jnp.float32) + bo_ref[...]
        out_ref[0] = out.astype(out_ref.dtype)


# ---------------------------------------------------------------------------
# Wrapper
# ---------------------------------------------------------------------------
def _pick_tile(s, cap):
    """Largest tile that divides s, is <= cap, and is sublane-friendly (mult of 8)."""
    if s <= cap:
        return s
    for t in range(cap, 7, -1):
        if s % t == 0 and t % 8 == 0:
            return t
    # TODO(synk): no remainder/masking path for awkward S; fall back to the full axis.
    return s


def _vmem_limit_bytes():
    """~3/4 of physical VMEM, capped at 96 MiB (=> ~48 MiB on v7x, 96 MiB on v5e/v6e)."""
    try:
        cap = pltpu.get_tpu_info().vmem_capacity_bytes
    except Exception:
        cap = 64 * 1024 * 1024
    return int(min(96 * 1024 * 1024, (cap * 3) // 4))


def multi_head_self_attention(q, k, v, params, *, num_heads,
                              q_tile=256, kv_tile=256, proj_tile=256):
    """q, k, v: [B, S, D] float32.  params: dict of PyTorch-convention weights."""
    B, S, D = q.shape
    depth = D // num_heads
    scale = 1.0 / math.sqrt(float(depth))

    # Cast activations to bf16 once (halves activation DMA bytes); matmuls still
    # accumulate in f32, bias adds / softmax stay f32.
    qx = q.astype(jnp.bfloat16)
    kx = k.astype(jnp.bfloat16)
    vx = v.astype(jnp.bfloat16)

    # PyTorch stores W as [out, in]; pre-transpose to [in, out] + bf16 once.
    wq = params["wq"].T.astype(jnp.bfloat16)
    wk = params["wk"].T.astype(jnp.bfloat16)
    wv = params["wv"].T.astype(jnp.bfloat16)
    wo = params["fc"].T.astype(jnp.bfloat16)
    bq = params["bq"].reshape(1, D).astype(jnp.float32)
    bk = params["bk"].reshape(1, D).astype(jnp.float32)
    bv = params["bv"].reshape(1, D).astype(jnp.float32)
    bo = params["bfc"].reshape(1, D).astype(jnp.float32)

    vmem_limit = _vmem_limit_bytes()

    # ---------------- pass 1: fused QKV projection + head split ----------------
    tp = _pick_tile(S, proj_tile)
    n_p = S // tp

    x_spec = pl.BlockSpec((1, tp, D), lambda b, i: (b, i, 0))
    w1_spec = pl.BlockSpec((D, D), lambda b, i: (0, 0),
                           pipeline_mode=pl.Buffered(1))       # constant block: 1 buffer
    b1_spec = pl.BlockSpec((1, D), lambda b, i: (0, 0),
                           pipeline_mode=pl.Buffered(1))
    h_spec = pl.BlockSpec((1, num_heads, tp, depth), lambda b, i: (b, 0, i, 0))

    proj_cost = pl.CostEstimate(
        flops=2 * 3 * B * S * D * D,
        transcendentals=0,
        bytes_accessed=(3 * B * S * D * 2        # bf16 activations in
                        + 3 * D * D * 2          # bf16 weights
                        + 3 * D * 4              # f32 biases
                        + 3 * B * S * D * 2))    # bf16 projected outputs

    qh, kh, vh = pl.pallas_call(
        functools.partial(_qkv_proj_kernel, num_heads, depth, scale),
        out_shape=(jax.ShapeDtypeStruct((B, num_heads, S, depth), jnp.bfloat16),
                   jax.ShapeDtypeStruct((B, num_heads, S, depth), jnp.bfloat16),
                   jax.ShapeDtypeStruct((B, num_heads, S, depth), jnp.bfloat16)),
        grid_spec=pltpu.PrefetchScalarGridSpec(
            num_scalar_prefetch=0,
            grid=(B, n_p),
            in_specs=[x_spec, x_spec, x_spec,
                      w1_spec, b1_spec, w1_spec, b1_spec, w1_spec, b1_spec],
            out_specs=[h_spec, h_spec, h_spec]),
        compiler_params=pltpu.CompilerParams(
            dimension_semantics=("parallel", "parallel"),
            vmem_limit_bytes=vmem_limit),
        cost_estimate=proj_cost,
    )(qx, kx, vx, wq, bq, wk, bk, wv, bv)

    # ---------------- pass 2: flash attention + output projection ----------------
    tq = _pick_tile(S, q_tile)
    tk = _pick_tile(S, kv_tile)
    nq = S // tq
    nk = S // tk

    qh_spec = pl.BlockSpec((1, num_heads, tq, depth), lambda b, qi, ki: (b, 0, qi, 0))
    kv_spec = pl.BlockSpec((1, num_heads, tk, depth), lambda b, qi, ki: (b, 0, ki, 0))
    wo_spec = pl.BlockSpec((D, D), lambda b, qi, ki: (0, 0),
                           pipeline_mode=pl.Buffered(1))
    bo_spec = pl.BlockSpec((1, D), lambda b, qi, ki: (0, 0),
                           pipeline_mode=pl.Buffered(1))
    out_spec = pl.BlockSpec((1, tq, D), lambda b, qi, ki: (b, qi, 0))

    attn_cost = pl.CostEstimate(
        flops=(2 * 2 * B * num_heads * S * S * depth   # QK^T and PV
               + 2 * B * S * D * D),                   # output projection
        transcendentals=B * num_heads * S * S,
        bytes_accessed=(B * S * D * 2                  # Q read once
                        + 2 * nq * B * S * D * 2       # K, V re-read per q-tile
                        + D * D * 2 + D * 4            # output-proj weight + bias
                        + B * S * D * 4))              # f32 output

    out = pl.pallas_call(
        _flash_attn_kernel,
        out_shape=jax.ShapeDtypeStruct((B, S, D), jnp.float32),
        grid_spec=pltpu.PrefetchScalarGridSpec(
            num_scalar_prefetch=0,
            grid=(B, nq, nk),
            in_specs=[qh_spec, kv_spec, kv_spec, wo_spec, bo_spec],
            out_specs=out_spec,
            scratch_shapes=[
                pltpu.VMEM((num_heads, tq, 1), jnp.float32),      # running max
                pltpu.VMEM((num_heads, tq, 1), jnp.float32),      # running sum
                pltpu.VMEM((num_heads, tq, depth), jnp.float32),  # output accumulator
            ]),
        compiler_params=pltpu.CompilerParams(
            dimension_semantics=("parallel", "parallel", "arbitrary"),
            vmem_limit_bytes=vmem_limit),
        cost_estimate=attn_cost,
    )(qh, kh, vh, wo, bo)
    return out


def _reference(q, k, v, params, *, num_heads):
    """Plain-JAX (f32) mirror of the PyTorch forward, for verification."""
    B, S, D = q.shape
    depth = D // num_heads

    def lin(x, w, b):
        return x @ w.T + b

    qq = lin(q, params["wq"], params["bq"]).reshape(B, S, num_heads, depth).transpose(0, 2, 1, 3)
    kk = lin(k, params["wk"], params["bk"]).reshape(B, S, num_heads, depth).transpose(0, 2, 1, 3)
    vv = lin(v, params["wv"], params["bv"]).reshape(B, S, num_heads, depth).transpose(0, 2, 1, 3)

    scores = jnp.einsum("bhqd,bhkd->bhqk", qq, kk) / jnp.sqrt(jnp.float32(depth))
    attn = jax.nn.softmax(scores, axis=-1)
    out = jnp.einsum("bhqk,bhkd->bhqd", attn, vv)
    out = out.transpose(0, 2, 1, 3).reshape(B, S, D)
    return lin(out, params["fc"], params["bfc"])


if __name__ == "__main__":
    B, S, D, H = 2, 8, 32, 4

    key = jax.random.PRNGKey(0)
    keys = jax.random.split(key, 12)

    # Deterministic synthetic parameters (PyTorch Linear shapes: W [out,in], b [out]).
    bound = 1.0 / math.sqrt(D)
    params = {
        "wq": jax.random.uniform(keys[0], (D, D), jnp.float32, -bound, bound),
        "bq": jax.random.uniform(keys[1], (D,), jnp.float32, -bound, bound),
        "wk": jax.random.uniform(keys[2], (D, D), jnp.float32, -bound, bound),
        "bk": jax.random.uniform(keys[3], (D,), jnp.float32, -bound, bound),
        "wv": jax.random.uniform(keys[4], (D, D), jnp.float32, -bound, bound),
        "bv": jax.random.uniform(keys[5], (D,), jnp.float32, -bound, bound),
        "fc": jax.random.uniform(keys[6], (D, D), jnp.float32, -bound, bound),
        "bfc": jax.random.uniform(keys[7], (D,), jnp.float32, -bound, bound),
    }

    q = jax.random.normal(keys[8], (B, S, D), jnp.float32)
    k = jax.random.normal(keys[9], (B, S, D), jnp.float32)
    v = jax.random.normal(keys[10], (B, S, D), jnp.float32)

    out = multi_head_self_attention(q, k, v, params, num_heads=H)
    out = jax.block_until_ready(out)

    ref = _reference(q, k, v, params, num_heads=H)
    assert out.shape == (B, S, D)
    # bf16 MXU inputs (f32 accumulation / f32 softmax) -> relaxed tolerance vs f32 ref.
    assert jnp.allclose(out, ref, atol=5e-2, rtol=5e-2), "mismatch vs reference"

    print("KERNEL_OK")
</pallas_src>

<mosaic_0001>
module attributes {stable_mosaic.version = 11 : i64} {
  func.func @_qkv_proj_kernel(%arg0: i32, %arg1: i32, %arg2: memref<1x8x32xbf16, #tpu.memory_space<vmem>>, %arg3: memref<1x8x32xbf16, #tpu.memory_space<vmem>>, %arg4: memref<1x8x32xbf16, #tpu.memory_space<vmem>>, %arg5: memref<32x32xbf16, #tpu.memory_space<vmem>>, %arg6: memref<1x32xf32, #tpu.memory_space<vmem>>, %arg7: memref<32x32xbf16, #tpu.memory_space<vmem>>, %arg8: memref<1x32xf32, #tpu.memory_space<vmem>>, %arg9: memref<32x32xbf16, #tpu.memory_space<vmem>>, %arg10: memref<1x32xf32, #tpu.memory_space<vmem>>, %arg11: memref<1x4x8x8xbf16, #tpu.memory_space<vmem>>, %arg12: memref<1x4x8x8xbf16, #tpu.memory_space<vmem>>, %arg13: memref<1x4x8x8xbf16, #tpu.memory_space<vmem>>) attributes {dimension_semantics = [#tpu.dimension_semantics<parallel>, #tpu.dimension_semantics<parallel>], iteration_bounds = array<i64: 2, 1>, scalar_prefetch = 0 : i64, scratch_operands = 0 : i64, tpu.core_type = #tpu.core_type<tc>, window_params = [{transform_indices = @transform_0, window_bounds = array<i64: 1, 8, 32>}, {transform_indices = @transform_1, window_bounds = array<i64: 1, 8, 32>}, {transform_indices = @transform_2, window_bounds = array<i64: 1, 8, 32>}, {pipeline_mode = #tpu.pipeline_mode<synchronous>, transform_indices = @transform_3, window_bounds = array<i64: 32, 32>}, {pipeline_mode = #tpu.pipeline_mode<synchronous>, transform_indices = @transform_4, window_bounds = array<i64: 1, 32>}, {pipeline_mode = #tpu.pipeline_mode<synchronous>, transform_indices = @transform_5, window_bounds = array<i64: 32, 32>}, {pipeline_mode = #tpu.pipeline_mode<synchronous>, transform_indices = @transform_6, window_bounds = array<i64: 1, 32>}, {pipeline_mode = #tpu.pipeline_mode<synchronous>, transform_indices = @transform_7, window_bounds = array<i64: 32, 32>}, {pipeline_mode = #tpu.pipeline_mode<synchronous>, transform_indices = @transform_8, window_bounds = array<i64: 1, 32>}, {transform_indices = @transform_9, window_bounds = array<i64: 1, 4, 8, 8>}, {transform_indices = @transform_10, window_bounds = array<i64: 1, 4, 8, 8>}, {transform_indices = @transform_11, window_bounds = array<i64: 1, 4, 8, 8>}]} {
    %c0 = arith.constant 0 : index
    %c0_0 = arith.constant 0 : index
    %c0_1 = arith.constant 0 : index
    %0 = vector.load %arg2[%c0, %c0_0, %c0_1] : memref<1x8x32xbf16, #tpu.memory_space<vmem>>, vector<1x8x32xbf16>
    %1 = vector.shape_cast %0 : vector<1x8x32xbf16> to vector<8x32xbf16>
    %c0_2 = arith.constant 0 : index
    %c0_3 = arith.constant 0 : index
    %2 = vector.load %arg5[%c0_2, %c0_3] : memref<32x32xbf16, #tpu.memory_space<vmem>>, vector<32x32xbf16>
    %cst = arith.constant dense<0.000000e+00> : vector<8x32xf32>
    %3 = tpu.matmul %1, %2, %cst {dimension_numbers = #tpu.dot_dimension_numbers<[1], [0], [0], [1], [0, 0, 1, 1], [], []>} : vector<8x32xbf16>, vector<32x32xbf16>, vector<8x32xf32> -> vector<8x32xf32>
    %c0_4 = arith.constant 0 : index
    %c0_5 = arith.constant 0 : index
    %4 = vector.load %arg6[%c0_4, %c0_5] : memref<1x32xf32, #tpu.memory_space<vmem>>, vector<1x32xf32>
    %5 = vector.broadcast %4 : vector<1x32xf32> to vector<8x32xf32>
    %6 = arith.addf %3, %5 : vector<8x32xf32>
    %cst_6 = arith.constant 0.353553385 : f32
    %7 = vector.broadcast %cst_6 : f32 to vector<8x32xf32>
    %8 = arith.mulf %6, %7 : vector<8x32xf32>
    %9 = arith.truncf %8 : vector<8x32xf32> to vector<8x32xbf16>
    %10 = vector.shape_cast %9 : vector<8x32xbf16> to vector<8x4x8xbf16>
    %11 = tpu.transpose %10, [1, 0, 2] : vector<8x4x8xbf16> -> vector<4x8x8xbf16>
    %c0_7 = arith.constant 0 : index
    %c0_8 = arith.constant 0 : index
    %c0_9 = arith.constant 0 : index
    %c0_10 = arith.constant 0 : index
    %12 = vector.load %arg11[%c0_7, %c0_8, %c0_9, %c0_10] : memref<1x4x8x8xbf16, #tpu.memory_space<vmem>>, vector<1x4x8x8xbf16>
    %13 = vector.shape_cast %12 : vector<1x4x8x8xbf16> to vector<4x8x8xbf16>
    %14 = vector.shape_cast %11 : vector<4x8x8xbf16> to vector<1x4x8x8xbf16>
    tpu.vector_store %arg11[%c0_7, %c0_8, %c0_9, %c0_10], %14 {strides = array<i32>} : memref<1x4x8x8xbf16, #tpu.memory_space<vmem>>, vector<1x4x8x8xbf16>,
    %c0_11 = arith.constant 0 : index
    %c0_12 = arith.constant 0 : index
    %c0_13 = arith.constant 0 : index
    %15 = vector.load %arg3[%c0_11, %c0_12, %c0_13] : memref<1x8x32xbf16, #tpu.memory_space<vmem>>, vector<1x8x32xbf16>
    %16 = vector.shape_cast %15 : vector<1x8x32xbf16> to vector<8x32xbf16>
    %c0_14 = arith.constant 0 : index
    %c0_15 = arith.constant 0 : index
    %17 = vector.load %arg7[%c0_14, %c0_15] : memref<32x32xbf16, #tpu.memory_space<vmem>>, vector<32x32xbf16>
    %cst_16 = arith.constant dense<0.000000e+00> : vector<8x32xf32>
    %18 = tpu.matmul %16, %17, %cst_16 {dimension_numbers = #tpu.dot_dimension_numbers<[1], [0], [0], [1], [0, 0, 1, 1], [], []>} : vector<8x32xbf16>, vector<32x32xbf16>, vector<8x32xf32> -> vector<8x32xf32>
    %c0_17 = arith.constant 0 : index
    %c0_18 = arith.constant 0 : index
    %19 = vector.load %arg8[%c0_17, %c0_18] : memref<1x32xf32, #tpu.memory_space<vmem>>, vector<1x32xf32>
    %20 = vector.broadcast %19 : vector<1x32xf32> to vector<8x32xf32>
    %21 = arith.addf %18, %20 : vector<8x32xf32>
    %22 = arith.truncf %21 : vector<8x32xf32> to vector<8x32xbf16>
    %23 = vector.shape_cast %22 : vector<8x32xbf16> to vector<8x4x8xbf16>
    %24 = tpu.transpose %23, [1, 0, 2] : vector<8x4x8xbf16> -> vector<4x8x8xbf16>
    %c0_19 = arith.constant 0 : index
    %c0_20 = arith.constant 0 : index
    %c0_21 = arith.constant 0 : index
    %c0_22 = arith.constant 0 : index
    %25 = vector.load %arg12[%c0_19, %c0_20, %c0_21, %c0_22] : memref<1x4x8x8xbf16, #tpu.memory_space<vmem>>, vector<1x4x8x8xbf16>
    %26 = vector.shape_cast %25 : vector<1x4x8x8xbf16> to vector<4x8x8xbf16>
    %27 = vector.shape_cast %24 : vector<4x8x8xbf16> to vector<1x4x8x8xbf16>
    tpu.vector_store %arg12[%c0_19, %c0_20, %c0_21, %c0_22], %27 {strides = array<i32>} : memref<1x4x8x8xbf16, #tpu.memory_space<vmem>>, vector<1x4x8x8xbf16>,
    %c0_23 = arith.constant 0 : index
    %c0_24 = arith.constant 0 : index
    %c0_25 = arith.constant 0 : index
    %28 = vector.load %arg4[%c0_23, %c0_24, %c0_25] : memref<1x8x32xbf16, #tpu.memory_space<vmem>>, vector<1x8x32xbf16>
    %29 = vector.shape_cast %28 : vector<1x8x32xbf16> to vector<8x32xbf16>
    %c0_26 = arith.constant 0 : index
    %c0_27 = arith.constant 0 : index
    %30 = vector.load %arg9[%c0_26, %c0_27] : memref<32x32xbf16, #tpu.memory_space<vmem>>, vector<32x32xbf16>
    %cst_28 = arith.constant dense<0.000000e+00> : vector<8x32xf32>
    %31 = tpu.matmul %29, %30, %cst_28 {dimension_numbers = #tpu.dot_dimension_numbers<[1], [0], [0], [1], [0, 0, 1, 1], [], []>} : vector<8x32xbf16>, vector<32x32xbf16>, vector<8x32xf32> -> vector<8x32xf32>
    %c0_29 = arith.constant 0 : index
    %c0_30 = arith.constant 0 : index
    %32 = vector.load %arg10[%c0_29, %c0_30] : memref<1x32xf32, #tpu.memory_space<vmem>>, vector<1x32xf32>
    %33 = vector.broadcast %32 : vector<1x32xf32> to vector<8x32xf32>
    %34 = arith.addf %31, %33 : vector<8x32xf32>
    %35 = arith.truncf %34 : vector<8x32xf32> to vector<8x32xbf16>
    %36 = vector.shape_cast %35 : vector<8x32xbf16> to vector<8x4x8xbf16>
    %37 = tpu.transpose %36, [1, 0, 2] : vector<8x4x8xbf16> -> vector<4x8x8xbf16>
    %c0_31 = arith.constant 0 : index
    %c0_32 = arith.constant 0 : index
    %c0_33 = arith.constant 0 : index
    %c0_34 = arith.constant 0 : index
    %38 = vector.load %arg13[%c0_31, %c0_32, %c0_33, %c0_34] : memref<1x4x8x8xbf16, #tpu.memory_space<vmem>>, vector<1x4x8x8xbf16>
    %39 = vector.shape_cast %38 : vector<1x4x8x8xbf16> to vector<4x8x8xbf16>
    %40 = vector.shape_cast %37 : vector<4x8x8xbf16> to vector<1x4x8x8xbf16>
    tpu.vector_store %arg13[%c0_31, %c0_32, %c0_33, %c0_34], %40 {strides = array<i32>} : memref<1x4x8x8xbf16, #tpu.memory_space<vmem>>, vector<1x4x8x8xbf16>,
    return
  }
  func.func @transform_0(%arg0: i32, %arg1: i32) -> (i32, i32, i32) {
    %c0_i32 = arith.constant 0 : i32
    %c0_i32_0 = arith.constant 0 : i32
    return %arg0, %arg1, %c0_i32 : i32, i32, i32
  }
  func.func @transform_1(%arg0: i32, %arg1: i32) -> (i32, i32, i32) {
    %c0_i32 = arith.constant 0 : i32
    %c0_i32_0 = arith.constant 0 : i32
    return %arg0, %arg1, %c0_i32 : i32, i32, i32
  }
  func.func @transform_2(%arg0: i32, %arg1: i32) -> (i32, i32, i32) {
    %c0_i32 = arith.constant 0 : i32
    %c0_i32_0 = arith.constant 0 : i32
    return %arg0, %arg1, %c0_i32 : i32, i32, i32
  }
  func.func @transform_3(%arg0: i32, %arg1: i32) -> (i32, i32) {
    %c0_i32 = arith.constant 0 : i32
    %c0_i32_0 = arith.constant 0 : i32
    %c0_i32_1 = arith.constant 0 : i32
    return %c0_i32, %c0_i32_0 : i32, i32
  }
  func.func @transform_4(%arg0: i32, %arg1: i32) -> (i32, i32) {
    %c0_i32 = arith.constant 0 : i32
    %c0_i32_0 = arith.constant 0 : i32
    %c0_i32_1 = arith.constant 0 : i32
    return %c0_i32, %c0_i32_0 : i32, i32
  }
  func.func @transform_5(%arg0: i32, %arg1: i32) -> (i32, i32) {
    %c0_i32 = arith.constant 0 : i32
    %c0_i32_0 = arith.constant 0 : i32
    %c0_i32_1 = arith.constant 0 : i32
    return %c0_i32, %c0_i32_0 : i32, i32
  }
  func.func @transform_6(%arg0: i32, %arg1: i32) -> (i32, i32) {
    %c0_i32 = arith.constant 0 : i32
    %c0_i32_0 = arith.constant 0 : i32
    %c0_i32_1 = arith.constant 0 : i32
    return %c0_i32, %c0_i32_0 : i32, i32
  }
  func.func @transform_7(%arg0: i32, %arg1: i32) -> (i32, i32) {
    %c0_i32 = arith.constant 0 : i32
    %c0_i32_0 = arith.constant 0 : i32
    %c0_i32_1 = arith.constant 0 : i32
    return %c0_i32, %c0_i32_0 : i32, i32
  }
  func.func @transform_8(%arg0: i32, %arg1: i32) -> (i32, i32) {
    %c0_i32 = arith.constant 0 : i32
    %c0_i32_0 = arith.constant 0 : i32
    %c0_i32_1 = arith.constant 0 : i32
    return %c0_i32, %c0_i32_0 : i32, i32
  }
  func.func @transform_9(%arg0: i32, %arg1: i32) -> (i32, i32, i32, i32) {
    %c0_i32 = arith.constant 0 : i32
    %c0_i32_0 = arith.constant 0 : i32
    %c0_i32_1 = arith.constant 0 : i32
    return %arg0, %c0_i32, %arg1, %c0_i32_0 : i32, i32, i32, i32
  }
  func.func @transform_10(%arg0: i32, %arg1: i32) -> (i32, i32, i32, i32) {
    %c0_i32 = arith.constant 0 : i32
    %c0_i32_0 = arith.constant 0 : i32
    %c0_i32_1 = arith.constant 0 : i32
    return %arg0, %c0_i32, %arg1, %c0_i32_0 : i32, i32, i32, i32
  }
  func.func @transform_11(%arg0: i32, %arg1: i32) -> (i32, i32, i32, i32) {
    %c0_i32 = arith.constant 0 : i32
    %c0_i32_0 = arith.constant 0 : i32
    %c0_i32_1 = arith.constant 0 : i32
    return %arg0, %c0_i32, %arg1, %c0_i32_0 : i32, i32, i32, i32
  }
}

</mosaic_0001>

<bundles_post_ra>
// kernel: tpu_custom_call.1
= control target key start
LH: loop header
LB: loop body
LE: loop exit
PB: predicated region body
PF: predicated region fallthrough
CT: control target
= control target key end

     0   :  { %s2666_s0 = inlined_call_operand.hbm [shape: bf16[2,8,32], index: 0, kind: input, shape index: {}]   ;;  %s2667_s1 = inlined_call_operand.hbm [shape: bf16[2,8,32], index: 1, kind: input, shape index: {}]   ;;  %s2668_s2 = inlined_call_operand.hbm [shape: bf16[2,8,32], index: 2, kind: input, shape index: {}]   ;;  %s2669_s3 = inlined_call_operand.hbm [shape: bf16[32,32], index: 3, kind: input, shape index: {}]   ;;  %s2670_s4 = inlined_call_operand.vmem [shape: f32[1,32], index: 4, kind: input, shape index: {}]   ;;  %s2671_s5 = inlined_call_operand.vmem [shape: bf16[32,32], index: 5, kind: input, shape index: {}]   ;;  %s2672_s6 = inlined_call_operand.vmem [shape: f32[1,32], index: 6, kind: input, shape index: {}]   ;;  %s2673_s7 = inlined_call_operand.hbm [shape: bf16[32,32], index: 7, kind: input, shape index: {}]   ;;  %s2674_s8 = inlined_call_operand.vmem [shape: f32[1,32], index: 8, kind: input, shape index: {}]   ;;  %s2675_s9 = inlined_call_operand.hbm [shape: bf16[2,4,8,8], index: 9, kind: output, shape index: {0}]   ;;  %s2676_s10 = inlined_call_operand.hbm [shape: bf16[2,4,8,8], index: 10, kind: output, shape index: {1}]   ;;  %s2677_s11 = inlined_call_operand.hbm [shape: bf16[2,4,8,8], index: 11, kind: output, shape index: {2}]  }
   0x1   :  { %2703 = sst [smem:[#allocation27_spill]] %s2667_s1 }
   0x2   :  { %2704 = sst [smem:[#allocation28_spill]] %s2669_s3 }
   0x3   :  { %2705 = sst [smem:[#allocation29_spill]] %s2673_s7 }
   0x4   :  { %2706 = sst [smem:[#allocation30_spill]] %s2675_s9 }
   0x5   :  { %2707 = sst [smem:[#allocation31_spill]] %s2677_s11 }
   0x6   :  { %17 = vsyncpa [#allocation3], 0 }
   0x7   :  { %19 = vsyncpa [#allocation3 + $0x1], 0 }
   0x8   :  { %20 = vsyncpa [#allocation6], 0 }
   0x9   :  { %22 = vsyncpa [#allocation6 + $0x1], 0 }
   0xa   :  { %23 = vsyncpa [#allocation9], 0 }
   0xb   :  { %24 = vsyncpa [#allocation4], 0 }
   0xc   :  { %26 = vsyncpa [#allocation4 + $0x1], 0 }
   0xd   :  { %27 = vsyncpa [#allocation13], 0 }
   0xe   :  { %29 = vsyncpa [#allocation13 + $0x1], 0  ;;  %s2134_s17 = smov 0   ;;  %s2136_s18 = smov 0  }
   0xf   :  { %s2138_s19 = smov 0   ;;  %s2140_s20 = smov 0  }
  0x10   :  { %s2142_s21 = smov 0   ;;  %s2144_s22 = smov 0  }
  0x11 LB: > { %2708 = sst [smem:[#allocation20_spill]] %s2032_s17  ;;  %s2165_s23 = sadd.s32 4294967295, %s2052_s22   ;;  %s2052_s22 = sphi %s2144_s22, %s35_s22   ;;  %s2048_s21 = sphi %s2142_s21, %s2751_s21   ;;  %s2044_s20 = sphi %s2140_s20, %s2750_s20   ;;  %s2040_s19 = sphi %s2138_s19, %s2754_s19   ;;  %s2036_s18 = sphi %s2136_s18, %s2753_s18   ;;  %s2032_s17 = sphi %s2134_s17, %s2752_s17  }
  0x12   : > { %2709 = sst [smem:[#allocation21_spill]] %s2048_s21  ;;  %s2678_s24 = sadd.s32 4294967294, %s2052_s22  }
  0x13   : > { %2710 = sst [smem:[#allocation22_spill]] %s2052_s22  ;;  %p69_p0 = scmp.ne.s32.totalorder %s2036_s18, %s2032_s17 }
  0x14   : > { %p2681_p1 = scmp.eq.s32.totalorder %s2165_s23, 0  ;;  %p283_p3 = scmp.eq.s32.totalorder %s2678_s24, 1 }
  0x15   : > { %p1557_p5 = scmp.ge.s32.totalorder %s2052_s22, 1  ;;  %p346_p7 = scmp.lt.s32.totalorder %s2052_s22, 3 }
  0x16   : > { %p2176_p4 = por %p2681_p1, %p69_p0  ;;  %p2181_p6 = por %p283_p3, %p69_p0 }
  0x17   : > { %p2186_p8 = pnand %p1557_p5, %p346_p7  ;;  %s2054_s28 = smov [#allocation8]  }
  0x18   : > { %s2711_s25 = scalar_select %p2176_p4, 1, 0 }
  0x19   : > { %s2712_s26 = scalar_select %p2181_p6, 1, 0 }
  0x1a   : > { %s2714_s27 = scalar_select %p2186_p8, 1, 0 }
  0x1b   : > { %2713 = sst [smem:[#allocation23_spill]] %s2712_s26  ;;  %s358_s29 = sshll.u32 %s2054_s28, 4  ;;  %s359_s29 = int_to_ptr.vmem [resolvable:$true] %s358_s29 }
  0x1c   : > { %p1655_p9 = pneg %p2186_p8  ;;  %s47_s12 = sadd.s32 1, %s2048_s21 }
  0x1d   : > { %s2716_s3 = sld [smem:[#allocation28_spill]] }
  0x1e   : > { %p2195_p11 = pnand %p1655_p9, %p2681_p1 }
  0x20   : > { %s2715_s30 = scalar_select %p2195_p11, 1, 0 }
  0x21   : > { %p2695_p13 = pneg %p2195_p11 }
  0x23   : > { %s1756_s15 = scalar_lea.hbm %s2716_s3, 256 }
  0x24   : > { %p1757_p12 = scmp.ne.s32.totalorder %s2716_s3, %s1756_s15  ;;  %p1763_p5 = scmp.lt.u32.totalorder %s1756_s15, %s2716_s3 }
  0x26   : > { %p1759_p0 = pnand %p2695_p13, %p1757_p12 }
  0x28   : > { %p1760_p3 = pneg %p1759_p0 }
  0x2a   : > { %p1765_p7 = pnand %p1763_p5, %p1760_p3 }
  0x2c   : > { %1768 = shalt.err (!%p1765_p7)
}
  0x2d   : > { %s1769_s17 = scalar_lea.vmem %s359_s29, 256  ;;  %p1777_p2 = scmp.lt.s32.totalorder %s359_s29, %s359_s29 }
  0x2e   : > { %p1770_p9 = scmp.ne.s32.totalorder %s359_s29, %s1769_s17  ;;  %p1778_p6 = scmp.lt.s32.totalorder %s1769_s17, %s1769_s17 }
  0x30   : > { %p1772_p10 = pnand %p1770_p9, %p2695_p13  ;;  %p1779_p4 = por %p1778_p6, %p1777_p2 }
  0x32   : > { %p1773_p1 = pneg %p1772_p10 }
  0x34   : > { %p1780_p8 = pnand %p1779_p4, %p1773_p1 }
  0x36   : > { %1783 = shalt.err (!%p1780_p8)
}
  0x37   : > { %s2684_s24 = smov 64   ;;  %s2685_s26 = smov 4  }
  0x38   : > { %1658 = dma.hbm_to_vmem [thread:$0]  (!%p2195_p11), %s2716_s3, 256, %s359_s29, [#allocation9], %s2684_s24, %s2684_s24, %s2685_s26  }
  0x39   : > { %p49_p1 = scmp.ge.s32.totalorder %s47_s12, 2  ;;  %s56_s14 = sadd.s32 1, %s2040_s19 }
  0x3a   : > { %p63_p2 = scmp.ne.s32.totalorder %s2040_s19, %s2036_s18  ;;  %p64_p4 = scmp.eq.s32.totalorder %s2052_s22, 0 }
  0x3b   : > { %s2756_s12 = smov (%p49_p1, %s47_s12), 0  ;;  %p2718_p8 = scmp.eq.s32.totalorder %s2165_s23, 1 }
  0x3c   : > { %2717 = sst [smem:[#allocation24_spill]] %s2756_s12  ;;  %p65_p6 = por %p64_p4, %p63_p2 }
  0x3d   : > { %p2233_p10 = por %p2718_p8, %p63_p2  ;;  %s51_s16 = ssub.s32 %s2048_s21, %s2756_s12 }
  0x3e   : > { %p1684_p12 = scmp.lt.s32.totalorder %s2052_s22, 2  ;;  %p54_p0 = scmp.eq.s32.totalorder %s51_s16, 0 }
  0x3f   : > { %s2719_s15 = scalar_select %p2233_p10, 1, 0 }
  0x40   : > { %s2687_s28 = sand.u32 1, %s2040_s19   ;;  %s2246_s17 = sshll.u32 %s2048_s21, 6 }
  0x41   : > { %2720 = sst [smem:[#allocation25_spill]] %s2719_s15  ;;  %s2243_s29 = sshll.u32 %s2687_s28, 2 }
  0x42   : > { %s2249_s13 = scalar_select %p54_p0, %s2040_s19, %s56_s14  }
  0x43   : > { %p2251_p3 = pnand %p1684_p12, %p65_p6  ;;  %s416_s26 = sand.u32 1, %s2052_s22  }
  0x44   : > { %2721 = sst [smem:[#allocation26_spill]] %s2249_s13  ;;  %s2723_s1 = sld [smem:[#allocation27_spill]] }
  0x45   : > { %s2722_s24 = scalar_select %p2251_p3, 1, 0 }
  0x46   : > { %s420_s28 = scalar_lea.vmem [#allocation5], %s2243_s29  ;;  %s2057_s14 = smov [#allocation10]  }
  0x47   : > { %s428_s21 = sshll.u32 %s420_s28, 4  ;;  %s2265_s13 = sshll.u32 %s2057_s14, 4  ;;  %s2263_s21 = int_to_ptr.vmem [resolvable:$true] %s428_s21  ;;  %s381_s13 = int_to_ptr.vmem [resolvable:$true] %s2265_s13 }
  0x48   : > { %s2267_s11 = scalar_lea.sflag [#allocation6], %s416_s26  ;;  %p2273_p7 = pneg %p2251_p3 }
  0x4a   : > { %s2260_s16 = scalar_lea.hbm %s2723_s1, %s2246_s17  ;;  %s1789_s22 = scalar_lea.hbm %s2723_s1, 128 }
  0x4b   : > { %s1784_s9 = scalar_lea.hbm %s2260_s16, 64  ;;  %p1790_p2 = scmp.lt.u32.totalorder %s2260_s16, %s2723_s1 }
  0x4c   : > { %p1785_p5 = scmp.ne.s32.totalorder %s2260_s16, %s1784_s9  ;;  %p1791_p4 = scmp.lt.u32.totalorder %s1789_s22, %s1784_s9 }
  0x4d   : > { %s2724_s3 = scalar_select %p2273_p7, 1, 0 }
  0x4e   : > { %p1787_p9 = pnand %p2273_p7, %p1785_p5  ;;  %p1792_p6 = por %p1791_p4, %p1790_p2 }
  0x4f   : > { %p1793_p8 = scmp.lt.u32.totalorder %s1784_s9, %s2260_s16 }
  0x50   : > { %p1788_p1 = pneg %p1787_p9 }
  0x51   : > { %p1794_p12 = por %p1793_p8, %p1792_p6 }
  0x53   : > { %p1795_p0 = pnand %p1794_p12, %p1788_p1 }
  0x55   : > { %1798 = shalt.err (!%p1795_p0)
}
  0x56   : > { %s1799_s26 = scalar_lea.vmem %s2263_s21, 64  ;;  %s2058_s12 = smov [#allocation5]  }
  0x57   : > { %p1800_p5 = scmp.ne.s32.totalorder %s2263_s21, %s1799_s26  ;;  %s1804_s28 = sshll.u32 %s2058_s12, 4  ;;  %s1805_s28 = int_to_ptr.vmem [resolvable:$false] %s1804_s28 }
  0x58   : > { %s1806_s15 = scalar_lea.vmem %s1805_s28, 128  ;;  %p1807_p10 = scmp.lt.s32.totalorder %s2263_s21, %s1805_s28 }
  0x59   : > { %p1802_p9 = pnand %p1800_p5, %p2273_p7  ;;  %p1808_p11 = scmp.lt.s32.totalorder %s1806_s15, %s1799_s26 }
  0x5b   : > { %p1803_p13 = pneg %p1802_p9  ;;  %p1809_p2 = por %p1808_p11, %p1807_p10 }
  0x5d   : > { %p1810_p4 = pnand %p1809_p2, %p1803_p13 }
  0x5f   : > { %1813 = shalt.err (!%p1810_p4)
}
  0x60   : > { %1668 = dma.hbm_to_vmem [thread:$0]  (!%p2251_p3), %s2260_s16, 64, %s2263_s21, %s2267_s11  }
  0x61   : > { %s2725_s7 = sld [smem:[#allocation29_spill]]  ;;  %p2726_p11 = scmp.ne.s32.totalorder %s2715_s30, 0 }
  0x63   : > { %p2727_p13 = pneg %p2726_p11 }
  0x67   : > { %s1814_s14 = scalar_lea.hbm %s2725_s7, 256 }
  0x68   : > { %p1815_p1 = scmp.ne.s32.totalorder %s2725_s7, %s1814_s14  ;;  %p1821_p8 = scmp.lt.u32.totalorder %s1814_s14, %s2725_s7 }
  0x6a   : > { %p1817_p10 = pnand %p1815_p1, %p2727_p13 }
  0x6c   : > { %p1818_p6 = pneg %p1817_p10 }
  0x6e   : > { %p1823_p12 = pnand %p1821_p8, %p1818_p6 }
  0x70   : > { %1826 = shalt.err (!%p1823_p12)
}
  0x71   : > { %s1827_s21 = scalar_lea.vmem %s381_s13, 256  ;;  %p2728_p5 = pmov %p2727_p13 }
  0x72   : > { %p1828_p0 = scmp.ne.s32.totalorder %s381_s13, %s1827_s21  ;;  %p1835_p4 = scmp.lt.s32.totalorder %s381_s13, %s381_s13 }
  0x73   : > { %p1836_p3 = scmp.lt.s32.totalorder %s1827_s21, %s1827_s21 }
  0x74   : > { %p1830_p9 = pnand %p1828_p0, %p2728_p5 }
  0x75   : > { %p1837_p7 = por %p1836_p3, %p1835_p4 }
  0x76   : > { %p1831_p2 = pneg %p1830_p9 }
  0x78   : > { %p1838_p1 = pnand %p1837_p7, %p1831_p2 }
  0x7a   : > { %1841 = shalt.err (!%p1838_p1)
}
  0x7b   : > { %s2729_s1 = smov 4   ;;  %s2730_s16 = smov 64  }
  0x7c   : > { %1661 = dma.hbm_to_vmem [thread:$0]  (!%p2726_p11), %s2725_s7, 256, %s381_s13, [#allocation9], %s2730_s16, %s2730_s16, %s2729_s1  }
  0x7d   : > { %s2325_s12 = scalar_lea.hbm %s2666_s0, %s2246_s17  ;;  %s401_s30 = scalar_lea.vmem [#allocation2], %s2243_s29 }
  0x7e   : > { %s409_s26 = sshll.u32 %s401_s30, 4  ;;  %s2334_s15 = scalar_lea.hbm %s2668_s2, %s2246_s17  ;;  %s2328_s26 = int_to_ptr.vmem [resolvable:$true] %s409_s26 }
  0x7f   : > { %s2731_s9 = sand.u32 1, %s2040_s19   ;;  %s1842_s1 = scalar_lea.hbm %s2325_s12, 64 }
  0x80   : > { %s398_s13 = scalar_lea.sflag [#allocation3], %s2731_s9  ;;  %p1843_p3 = scmp.ne.s32.totalorder %s2325_s12, %s1842_s1 }
  0x81   : > { %p2732_p7 = scmp.ne.s32.totalorder %s2724_s3, 0  ;;  %s1847_s14 = scalar_lea.hbm %s2666_s0, 128 }
  0x82   : > { %p1848_p10 = scmp.lt.u32.totalorder %s2325_s12, %s2666_s0  ;;  %p1849_p6 = scmp.lt.u32.totalorder %s1847_s14, %s1842_s1 }
  0x83   : > { %p1845_p11 = pnand %p1843_p3, %p2732_p7  ;;  %p1851_p12 = scmp.lt.u32.totalorder %s1842_s1, %s2325_s12 }
  0x84   : > { %p1850_p8 = por %p1849_p6, %p1848_p10 }
  0x85   : > { %p1846_p13 = pneg %p1845_p11 }
  0x86   : > { %p1852_p0 = por %p1851_p12, %p1850_p8 }
  0x88   : > { %p1853_p5 = pnand %p1852_p0, %p1846_p13 }
  0x8a   : > { %1856 = shalt.err (!%p1853_p5)
}
  0x8b   : > { %s1857_s17 = scalar_lea.vmem %s2328_s26, 64  ;;  %s2059_s28 = smov [#allocation2]  }
  0x8c   : > { %p1858_p9 = scmp.ne.s32.totalorder %s2328_s26, %s1857_s17  ;;  %s1862_s21 = sshll.u32 %s2059_s28, 4  ;;  %s1863_s21 = int_to_ptr.vmem [resolvable:$false] %s1862_s21 }
  0x8d   : > { %s1864_s7 = scalar_lea.vmem %s1863_s21, 128  ;;  %p1865_p1 = scmp.lt.s32.totalorder %s2328_s26, %s1863_s21 }
  0x8e   : > { %p1860_p2 = pnand %p1858_p9, %p2732_p7  ;;  %p1866_p3 = scmp.lt.s32.totalorder %s1864_s7, %s1857_s17 }
  0x90   : > { %p1861_p4 = pneg %p1860_p2  ;;  %p1867_p11 = por %p1866_p3, %p1865_p1 }
  0x92   : > { %p1868_p10 = pnand %p1867_p11, %p1861_p4 }
  0x94   : > { %1871 = shalt.err (!%p1868_p10)
}
  0x95   : > { %p2733_p13 = scmp.ne.s32.totalorder %s2722_s24, 0  ;;  %s439_s9 = scalar_lea.vmem [#allocation7], %s2243_s29 }
  0x96   : > { %s447_s1 = sshll.u32 %s439_s9, 4  ;;  %s1872_s16 = scalar_lea.hbm %s2334_s15, 64  ;;  %s448_s1 = int_to_ptr.vmem [resolvable:$true] %s447_s1 }
  0x97   : > { %1665 = dma.hbm_to_vmem [thread:$0]  (!%p2733_p13), %s2325_s12, 64, %s2328_s26, %s398_s13  }
  0x98   : > { %p1873_p6 = scmp.ne.s32.totalorder %s2334_s15, %s1872_s16  ;;  %s1877_s30 = scalar_lea.hbm %s2668_s2, 128 }
  0x99   : > { %p1878_p0 = scmp.lt.u32.totalorder %s2334_s15, %s2668_s2  ;;  %p1879_p5 = scmp.lt.u32.totalorder %s1877_s30, %s1872_s16 }
  0x9a   : > { %p1875_p8 = pnand %p1873_p6, %p2732_p7  ;;  %p1881_p2 = scmp.lt.u32.totalorder %s1872_s16, %s2334_s15 }
  0x9b   : > { %p1880_p9 = por %p1879_p5, %p1878_p0 }
  0x9c   : > { %p1876_p12 = pneg %p1875_p8 }
  0x9d   : > { %p1882_p4 = por %p1881_p2, %p1880_p9 }
  0x9f   : > { %p1883_p1 = pnand %p1882_p4, %p1876_p12 }
  0xa1   : > { %1886 = shalt.err (!%p1883_p1)
}
  0xa2   : > { %s1887_s29 = scalar_lea.vmem %s448_s1, 64  ;;  %s2060_s12 = smov [#allocation7]  }
  0xa3   : > { %p1888_p3 = scmp.ne.s32.totalorder %s448_s1, %s1887_s29  ;;  %s1892_s26 = sshll.u32 %s2060_s12, 4  ;;  %s1893_s26 = int_to_ptr.vmem [resolvable:$false] %s1892_s26 }
  0xa4   : > { %s1894_s13 = scalar_lea.vmem %s1893_s26, 128  ;;  %p1895_p6 = scmp.lt.s32.totalorder %s448_s1, %s1893_s26 }
  0xa5   : > { %p1890_p11 = pnand %p1888_p3, %p2732_p7  ;;  %p1896_p8 = scmp.lt.s32.totalorder %s1894_s13, %s1887_s29 }
  0xa7   : > { %p1891_p10 = pneg %p1890_p11  ;;  %p1897_p13 = por %p1896_p8, %p1895_p6 }
  0xa9   : > { %p1898_p0 = pnand %p1897_p13, %p1891_p10 }
  0xab   : > { %1901 = shalt.err (!%p1898_p0)
}
  0xac   : > { %p2734_p5 = scmp.ne.s32.totalorder %s2722_s24, 0  ;;  %p2735_p12 = scmp.ne.s32.totalorder %s2714_s27, 0 }
  0xad   : > { %s2381_s3 = sand.u32 (!%p2735_p12), 1, %s2036_s18   ;;  %p2736_p7 = scmp.ne.s32.totalorder (!%p2735_p12), %s2711_s25, 0 }
  0xae   : > { %1671 = dma.hbm_to_vmem [thread:$0]  (!%p2734_p5), %s2334_s15, 64, %s448_s1, %s2267_s11  }
  0xaf   : > { %456 = sbr.rel (%p2735_p12) target bundleno = 629 (0x275), region = 56  ;;  %s2384_s21 = sshll.u32 (!%p2735_p12), %s2381_s3, 2 }
  0xb0   : > { %s459_s7 = scalar_lea.sflag (!%p2735_p12), [#allocation3], %s2381_s3  ;;  %s462_s9 = scalar_lea.vmem (!%p2735_p12), [#allocation2], %s2384_s21 }
  0xb6   : > { %2011 = dma.done.wait (%p2736_p7), %s459_s7, 64  }
  0xb7   : > { %2013 = vsyncadd (%p2736_p7), %s459_s7, 4294967232  ;;  %s467_s11 = sand.u32 1, %s2165_s23   ;;  %s471_s24 = scalar_lea.vmem [#allocation5], %s2384_s21 }
  0xb8   : > { %s468_s27 = scalar_lea.sflag [#allocation6], %s467_s11 }
  0xb9   : > { %2015 = dma.done.wait (%p2736_p7), %s468_s27, 128  }
  0xba   : > { %2017 = vsyncadd (%p2736_p7), %s468_s27, 4294967168  ;;  %s480_s15 = scalar_lea.vmem [#allocation7], %s2384_s21  ;;  %p2737_p13 = scmp.eq.s32.totalorder %s2165_s23, 0 }
  0xbc   : > { %2019 = dma.done.wait (%p2737_p13), [#allocation9], 512   ;;  %p2738_p9 = pmov %p2737_p13 }
  0xbd   : > { %v2061_v0 = vmov 0.0   ;;  %vm2062_vm0 = vmmov 0   ;;  %v1750_v1 = vld [vmem:[%s2671_s5] sm:$0xff]   ;;  %v1751_v2 = vld [vmem:[#allocation8] sm:$0xff]   ;;  %v1753_v4 = vld [vmem:[#allocation8 + $0x8] sm:$0xff]   ;;  %vm572_vm1 = vcmask 261120   ;;  %v628_v34 = vlaneseq }
  0xbe   : > { %2021 = vsyncadd (%p2738_p9), [#allocation9], 4294966784  ;;  %1619 = vmatprep.subr.bf16.mxu1 %v2061_v0  ;;  %1611 = vmatprep.subr.bf16.mxu0 %v2061_v0  ;;  %v1752_v3 = vld [vmem:[%s2671_s5 + $0x8] sm:$0xff]   ;;  %v795_v5 = vld [vmem:[%s471_s24] sm:$0xf]  ;;  %s2063_s29 = smov 104  }
  0xbf   : > { %1623 = vmatprep.mubr.msk.bf16.mxu1 %vm2062_vm0, %v2061_v0  ;;  %1615 = vmatprep.mubr.msk.bf16.mxu0 %vm2062_vm0, %v2061_v0  ;;  %v548_v6 = vld [vmem:[%s462_s9] sm:$0xf]  ;;  %v1754_v7 = vld [vmem:[#allocation10] sm:$0xff]   ;;  %v1755_v8 = vld [vmem:[#allocation10 + $0x8] sm:$0xff]   ;;  %s2064_s12 = smov 120   ;;  %s2065_s21 = smov 112  }
  0xc0   : > { %1620 = vmatpush3.bf16.msra.mxu1 %v1750_v1  ;;  %1612 = vmatpush3.bf16.msra.mxu0 %v1751_v2  ;;  %v1039_v9 = vld [vmem:[%s480_s15] sm:$0xf]  ;;  %v2066_v32 = vmov 1983009808   ;;  %v2067_v35 = vmov 1934713408  }
  0xc1   : > { %1621 = vmatprep.subr.bf16.mxu1 %v2061_v0  ;;  %1613 = vmatprep.subr.bf16.mxu0 %v2061_v0  ;;  %v1580_v10 = vld [vmem:[%s2672_s6] ss:$0 sm:$0xff]  ;;  %v626_v33 = vunpack.c.l.s4 %v2066_v32  ;;  %v643_v36 = vunpack.c.l.s4 %v2067_v35  ;;  %v629_v38 = vshrl.u32 %v628_v34, 7  ;;  %v2068_v54 = vmov 0   ;;  %s2463_s7 = sshll.u32 %s2381_s3, 4  ;;  %s2479_s9 = sshll.u32 %s2044_s20, 8 }
  0xc2   : > { %v1576_v11 = vld [vmem:[%s2670_s4] ss:$0 sm:$0xff]  ;;  %vm790_vm2 = vcmask 60416   ;;  %s539_s27 = scalar_lea.vmem [#allocation12], %s2463_s7  ;;  %s2739_s1 = sld [smem:[#allocation25_spill]] }
  0xc3   : > { %v1584_v25 = vld [vmem:[%s2674_s8] ss:$0 sm:$0xff]  ;;  %v627_v37 = vunpack.c.0.s8 %v626_v33  ;;  %v644_v39 = vunpack.c.0.s8 %v643_v36  ;;  %s1325_s24 = sshll.u32 %s539_s27, 4  ;;  %s2492_s16 = scalar_lea.hbm %s2676_s10, %s2479_s9  ;;  %s2494_s24 = int_to_ptr.vmem [resolvable:$true] %s1325_s24 }
  0xc4   : > { %1622 = vmatpush3.bf16.msra.mxu1 %v1752_v3  ;;  %1614 = vmatpush3.bf16.msra.mxu0 %v1753_v4  ;;  %s2513_s25 = scalar_lea.sflag [#allocation13], %s467_s11  ;;  %s1902_s22 = scalar_lea.vmem %s2494_s24, 256 }
  0xc5   : > { %1627 = vmatprep.subr.bf16.mxu0 %v2061_v0  ;;  %v2425_v40 = vsub.s32 %v627_v37, %v629_v38  ;;  %v2428_v44 = vsub.s32 %v644_v39, %v629_v38  ;;  %p1903_p2 = scmp.ne.s32.totalorder %s2494_s24, %s1902_s22  ;;  %s2069_s14 = smov [#allocation12]  }
  0xc6   : > { %s1906_s30 = sshll.u32 %s2069_s14, 4  ;;  %s1907_s30 = int_to_ptr.vmem [resolvable:$false] %s1906_s30 }
  0xc7   : > { %1624 = vmatmul.mubr.msk.bf16.vlgmr.msra.gmra.mrb[0].mxu1 %vm572_vm1, %v795_v5  ;;  %1616 = vmatmul.mubr.msk.bf16.vlgmr.msra.gmra.mrb[0].mxu0 %vm572_vm1, %v548_v6  ;;  %s1908_s17 = scalar_lea.vmem %s1907_s30, 512  ;;  %p1909_p11 = scmp.lt.s32.totalorder %s2494_s24, %s1907_s30 }
  0xc8   : > { %1628 = vmatpush3.bf16.msra.mxu0 %v1754_v7  ;;  %1631 = vmatprep.mubr.msk.bf16.mxu0 %vm2062_vm0, %v2061_v0  ;;  %p2740_p4 = scmp.ne.s32.totalorder %s2739_s1, 0  ;;  %p1910_p10 = scmp.lt.s32.totalorder %s1908_s17, %s1902_s22 }
  0xc9   : > { %1629 = vmatprep.subr.bf16.mxu0 %v2061_v0 }
  0xca   : > { %p1904_p1 = pnand %p1903_p2, %p2740_p4  ;;  %p1911_p6 = por %p1910_p10, %p1909_p11 }
  0xcc   : > { %1630 = vmatpush3.bf16.msra.mxu0 %v1755_v8  ;;  %p1905_p3 = pneg %p1904_p1 }
  0xce   : > { %p1912_p8 = pnand %p1911_p6, %p1905_p3 }
  0xcf   : > { %1632 = vmatmul.mubr.msk.bf16.vlgmr.msra.gmra.mrb[4].mxu0 %vm572_vm1, %v1039_v9 }
 0x19a   : > { %v856_v12 = vpop.f32.mrb[0].mxu1  ;;  %v610_v14 = vpop.f32.mrb[0].mxu0 }
 0x19b   : > { %v857_v13 = vadd.f32 %v1580_v10, %v856_v12  ;;  %v1625_v15 = vpop.f32.mrb[1].mxu1  ;;  %v611_v16 = vadd.f32 %v1576_v11, %v610_v14  ;;  %v1617_v17 = vpop.f32.mrb[1].mxu0 }
 0x19c   : > { %v859_v18 = vpop.f32.mrb[2].mxu1  ;;  %v613_v20 = vpop.f32.mrb[2].mxu0 }
 0x19d   : > { %v862_v19 = vpack.c.bf16 %v857_v13, %v857_v13  ;;  %v1626_v21 = vpop.f32.mrb[3].mxu1  ;;  %v616_v22 = vmul.f32 0.35355338, %v611_v16  ;;  %v1618_v23 = vpop.f32.mrb[3].mxu0 }
 0x19f   : > { %868 = vrot.lane.b32.xlu1 %v862_v19, %s2063_s29  ;;  %864 = vrot.lane.b32.xlu0 %v862_v19, %s2064_s12  ;;  %v617_v24 = vpack.c.bf16 %v616_v22, %v616_v22  ;;  %v876_v53 = vrot.slane %v862_v19, %v2425_v40 }
 0x1a1   : > { %v631_v57 = vrot.slane %v617_v24, %v2425_v40 }
 0x1a2   : > { %v1100_v26 = vpop.f32.mrb[4].mxu0 }
 0x1a3   : > { %866 = vrot.lane.b32.xlu0 %v862_v19, %s2065_s21  ;;  %619 = vrot.lane.b32.xlu1 %v617_v24, %s2064_s12  ;;  %v1101_v27 = vadd.f32 %v1584_v25, %v1100_v26  ;;  %v1633_v28 = vpop.f32.mrb[5].mxu0 }
 0x1a4   : > { %v1103_v29 = vpop.f32.mrb[6].mxu0 }
 0x1a5   : > { %v1634_v30 = vpop.f32.mrb[7].mxu0  ;;  %v1106_v31 = vpack.c.bf16 %v1101_v27, %v1101_v27 }
 0x1a7   : > { %621 = vrot.lane.b32.xlu0 %v617_v24, %s2065_s21  ;;  %623 = vrot.lane.b32.xlu1 %v617_v24, %s2063_s29  ;;  %v2440_v63 = vrot.slane %v1106_v31, %v2425_v40 }
 0x1ab   : > { %1110 = vrot.lane.b32.xlu1 %v1106_v31, %s2065_s21  ;;  %1108 = vrot.lane.b32.xlu0 %v1106_v31, %s2064_s12 }
 0x1af   : > { %1112 = vrot.lane.b32.xlu0 %v1106_v31, %s2063_s29 }
 0x211   : > { %v869_v41 = vpop.permute.xlu1 %868  ;;  %v865_v42 = vpop.permute.xlu0 %864 }
 0x212   : > { %v918_v43 = vrot.slane %v869_v41, %v2425_v40  ;;  %v910_v45 = vrot.slane %v865_v42, %v2425_v40 }
 0x214   : > { %v919_v46 = vcombine.low %v910_v45, %v918_v43  ;;  %v920_v47 = vcombine.high %v910_v45, %v918_v43 }
 0x215   : > { %v867_v48 = vpop.permute.xlu0 %866  ;;  %v620_v49 = vpop.permute.xlu1 %619 }
 0x216   : > { %v927_v50 = vrot.slane %v919_v46, %v2428_v44  ;;  %v934_v51 = vrot.slane %v920_v47, %v2428_v44  ;;  %v884_v52 = vrot.slane %v867_v48, %v2425_v40  ;;  %v665_v60 = vrot.slane %v620_v49, %v2425_v40 }
 0x218   : > { %v935_v55 = vcombine.high %v927_v50, %v2068_v54  ;;  %v936_v56 = vcombine.high %v934_v51, %v2068_v54  ;;  %v885_v58 = vcombine.low %v876_v53, %v884_v52  ;;  %v886_v59 = vcombine.high %v876_v53, %v884_v52 }
 0x219   : > { %v622_v61 = vpop.permute.xlu0 %621  ;;  %v624_v62 = vpop.permute.xlu1 %623  ;;  %v942_v0 = vshrl.u32 %v927_v50, 16  ;;  %v958_v1 = vshrl.u32 %v934_v51, 16 }
 0x21a   : > { %v639_v2 = vrot.slane %v622_v61, %v2425_v40  ;;  %v673_v3 = vrot.slane %v624_v62, %v2425_v40  ;;  %v950_v4 = vshrl.u32 %v935_v55, 16  ;;  %v966_v5 = vshrl.u32 %v936_v56, 16 }
 0x21b   : > { %v893_v6 = vrot.slane %v885_v58, %v2428_v44  ;;  %v900_v7 = vrot.slane %v886_v59, %v2428_v44 }
 0x21c   : > { %v640_v8 = vcombine.low %v631_v57, %v639_v2  ;;  %v641_v9 = vcombine.high %v631_v57, %v639_v2  ;;  %v674_v10 = vcombine.low %v665_v60, %v673_v3  ;;  %v675_v11 = vcombine.high %v665_v60, %v673_v3 }
 0x21d   : > { %v901_v12 = vcombine.high %v893_v6, %v2068_v54  ;;  %v902_v13 = vcombine.high %v900_v7, %v2068_v54  ;;  %v939_v14 = vpack.i.b16 %v927_v50, %v893_v6  ;;  %v941_v15 = vshrl.u32 %v893_v6, 16  ;;  %v1111_v32 = vpop.permute.xlu1 %1110 }
 0x21e   : > { %v955_v16 = vpack.i.b16 %v934_v51, %v900_v7  ;;  %v957_v17 = vshrl.u32 %v900_v7, 16  ;;  %v648_v18 = vrot.slane %v640_v8, %v2428_v44  ;;  %v655_v19 = vrot.slane %v641_v9, %v2428_v44 }
 0x21f   : > { %v943_v20 = vpack.i.b16 %v942_v0, %v941_v15  ;;  %v947_v21 = vpack.i.b16 %v935_v55, %v901_v12  ;;  %v949_v22 = vshrl.u32 %v901_v12, 16  ;;  %v963_v23 = vpack.i.b16 %v936_v56, %v902_v13 }
 0x220   : > { %v959_v24 = vpack.i.b16 %v958_v1, %v957_v17  ;;  %v965_v25 = vshrl.u32 %v902_v13, 16  ;;  %v969_v26 = vcombine.low %v939_v14, %v955_v16  ;;  %v656_v27 = vcombine.high %v648_v18, %v2068_v54  ;;  %v1109_v1 = vpop.permute.xlu0 %1108 }
 0x221   : > { %v951_v28 = vpack.i.b16 %v950_v4, %v949_v22  ;;  %v977_v29 = vcombine.low %v947_v21, %v963_v23  ;;  %v657_v30 = vcombine.high %v655_v19, %v2068_v54  ;;  %v696_v31 = vshrl.u32 %v648_v18, 16 }
 0x222   : > { %v967_v33 = vpack.i.b16 %v966_v5, %v965_v25  ;;  %v976_v34 = vrot.slane %v969_v26, %v2425_v40  ;;  %v994_v35 = vcombine.low %v943_v20, %v959_v24  ;;  %v704_v36 = vshrl.u32 %v656_v27, 16 }
 0x223   : > { %v984_v37 = vrot.slane %v977_v29, %v2425_v40  ;;  %v712_v38 = vshrl.u32 %v655_v19, 16  ;;  %v720_v39 = vshrl.u32 %v657_v30, 16  ;;  %v682_v41 = vrot.slane %v674_v10, %v2428_v44 }
 0x224   : > { %v1001_v42 = vrot.slane %v994_v35, %v2425_v40  ;;  %v1002_v43 = vcombine.low %v951_v28, %v967_v33  ;;  %v689_v45 = vrot.slane %v675_v11, %v2428_v44  ;;  %v1128_v46 = vrot.slane %v1111_v32, %v2425_v40  ;;  %v1113_v24 = vpop.permute.xlu0 %1112 }
 0x225   : > { %v985_v47 = vcombine.low %v976_v34, %v984_v37  ;;  %v690_v48 = vcombine.high %v682_v41, %v2068_v54  ;;  %v694_v49 = vpack.i.b16 %v682_v41, %v648_v18  ;;  %v697_v50 = vshrl.u32 %v682_v41, 16 }
 0x226   : > { %v1009_v51 = vrot.slane %v1002_v43, %v2425_v40  ;;  %v691_v52 = vcombine.high %v689_v45, %v2068_v54  ;;  %v710_v53 = vpack.i.b16 %v689_v45, %v655_v19  ;;  %v713_v55 = vshrl.u32 %v689_v45, 16 }
 0x227   : > { %v992_v56 = vrot.slane %v985_v47, %v2428_v44  ;;  %v698_v57 = vpack.i.b16 %v697_v50, %v696_v31  ;;  %v702_v58 = vpack.i.b16 %v690_v48, %v656_v27  ;;  %v705_v59 = vshrl.u32 %v690_v48, 16 }
 0x228   : > { %v1010_v60 = vcombine.low %v1001_v42, %v1009_v51  ;;  %v714_v61 = vpack.i.b16 %v713_v55, %v712_v38  ;;  %v718_v62 = vpack.i.b16 %v691_v52, %v657_v30  ;;  %v721_v0 = vshrl.u32 %v691_v52, 16 }
 0x229   : > { %v993_v2 = vcombine.high %v992_v56, %v2068_v54  ;;  %v706_v3 = vpack.i.b16 %v705_v59, %v704_v36  ;;  %v724_v4 = vcombine.low %v694_v49, %v710_v53  ;;  %v1023_v6 = vshrl.u32 %v992_v56, 16 }
 0x22a   : > { %v1017_v5 = vrot.slane %v1010_v60, %v2428_v44  ;;  %v722_v7 = vpack.i.b16 %v721_v0, %v720_v39  ;;  %v732_v8 = vcombine.low %v702_v58, %v718_v62  ;;  %v749_v10 = vcombine.low %v698_v57, %v714_v61 }
 0x22b   : > { %v731_v9 = vrot.slane %v724_v4, %v2425_v40  ;;  %v1129_v11 = vcombine.low %v2440_v63, %v1128_v46  ;;  %v1130_v12 = vcombine.high %v2440_v63, %v1128_v46  ;;  %v1031_v17 = vshrl.u32 %v993_v2, 16 }
 0x22c   : > { %v1018_v13 = vcombine.high %v1017_v5, %v2068_v54  ;;  %v1021_v14 = vpack.i.b16 %v1017_v5, %v992_v56  ;;  %v1024_v15 = vshrl.u32 %v1017_v5, 16  ;;  %v739_v16 = vrot.slane %v732_v8, %v2425_v40 }
 0x22d   : > { %v757_v18 = vcombine.low %v706_v3, %v722_v7  ;;  %v2473_v19 = vrot.slane %v1129_v11, %v2428_v44  ;;  %v2476_v20 = vrot.slane %v1130_v12, %v2428_v44  ;;  %v756_v25 = vrot.slane %v749_v10, %v2425_v40 }
 0x22e   : > { %v1025_v63 = vpack.i.b16 %v1024_v15, %v1023_v6  ;;  %v1029_v21 = vpack.i.b16 %v1018_v13, %v993_v2  ;;  %v1032_v22 = vshrl.u32 %v1018_v13, 16  ;;  %v740_v23 = vcombine.low %v731_v9, %v739_v16  ;;  %1035 = vst.msk [vmem:[%s539_s27] sm:$0xf] %vm790_vm2, %v1021_v14 }
 0x22f   : > { %v764_v26 = vrot.slane %v757_v18, %v2425_v40  ;;  %v1154_v30 = vrot.slane %v1109_v1, %v2425_v40  ;;  %v1162_v31 = vrot.slane %v1113_v24, %v2425_v40  ;;  %v2503_v33 = vcombine.high %v2473_v19, %v2068_v54 }
 0x230   : > { %v1033_v27 = vpack.i.b16 %v1032_v22, %v1031_v17  ;;  %v747_v28 = vrot.slane %v740_v23, %v2428_v44  ;;  %1036 = vst.msk [vmem:[%s539_s27 + $0x4] sm:$0xf] %vm790_vm2, %v1025_v63  ;;  %1037 = vst.msk [vmem:[%s539_s27 + $0x8] sm:$0xf] %vm790_vm2, %v1029_v21  ;;  %v2507_v34 = vcombine.high %v2476_v20, %v2068_v54 }
 0x231   : > { %v765_v29 = vcombine.low %v756_v25, %v764_v26  ;;  %v1163_v36 = vcombine.low %v1154_v30, %v1162_v31  ;;  %v1164_v37 = vcombine.high %v1154_v30, %v1162_v31 }
 0x232   : > { %v2499_v32 = vcombine.high %v747_v28, %v2068_v54  ;;  %1038 = vst.msk [vmem:[%s539_s27 + $0xc] sm:$0xf] %vm790_vm2, %v1033_v27 }
 0x233   : > { %v772_v35 = vrot.slane %v765_v29, %v2428_v44 }
 0x234   : > { %1915 = shalt.err (!%p1912_p8)
}
 0x235   : > { %s1916_s23 = scalar_lea.hbm %s2492_s16, 256  ;;  %s1920_s29 = scalar_lea.hbm %s2676_s10, 512 }
 0x236   : > { %p1917_p0 = scmp.ne.s32.totalorder %s2492_s16, %s1916_s23  ;;  %p1921_p7 = scmp.lt.u32.totalorder %s2492_s16, %s2676_s10 }
 0x237   : > { %p1922_p13 = scmp.lt.u32.totalorder %s1920_s29, %s1916_s23  ;;  %p1924_p2 = scmp.lt.u32.totalorder %s1916_s23, %s2492_s16 }
 0x238   : > { %p1918_p5 = pnand %p1917_p0, %p2740_p4 }
 0x239   : > { %p1923_p9 = por %p1922_p13, %p1921_p7 }
 0x23a   : > { %p1919_p12 = pneg %p1918_p5 }
 0x23b   : > { %p1925_p1 = por %p1924_p2, %p1923_p9 }
 0x23d   : > { %p1926_p3 = pnand %p1925_p1, %p1919_p12 }
 0x23f   : > { %1929 = shalt.err (!%p1926_p3)
}
 0x240   : > { %s2070_s13 = smov 64   ;;  %s2071_s21 = smov 4   ;;  %v778_v38 = vshrl.u32 %v747_v28, 16  ;;  %v1185_v39 = vshrl.u32 %v2473_v19, 16  ;;  %v1201_v41 = vshrl.u32 %v2476_v20, 16  ;;  %v773_v42 = vcombine.high %v772_v35, %v2068_v54 }
 0x241   : > { %1650 = dma.vmem_to_hbm [thread:$0]  (%p2740_p4), %s2494_s24, 256, %s2492_s16, %s2513_s25, %s2070_s13, %s2070_s13, %s2071_s21   ;;  %v776_v43 = vpack.i.b16 %v772_v35, %v747_v28  ;;  %v779_v45 = vshrl.u32 %v772_v35, 16  ;;  %v1171_v46 = vrot.slane %v1163_v36, %v2428_v44  ;;  %v786_v47 = vshrl.u32 %v2499_v32, 16 }
 0x242   : > { %v1193_v48 = vshrl.u32 %v2503_v33, 16  ;;  %v1209_v49 = vshrl.u32 %v2507_v34, 16  ;;  %v1178_v50 = vrot.slane %v1164_v37, %v2428_v44  ;;  %s532_s27 = scalar_lea.vmem [#allocation11], %s2463_s7  ;;  %v784_v52 = vpack.i.b16 %v773_v42, %v2499_v32  ;;  %s2741_s16 = sld [smem:[#allocation30_spill]] }
 0x243   : > { %s1308_s24 = sshll.u32 %s532_s27, 4  ;;  %v780_v51 = vpack.i.b16 %v779_v45, %v778_v38  ;;  %v787_v53 = vshrl.u32 %v773_v42, 16  ;;  %v1179_v55 = vcombine.high %v1171_v46, %v2068_v54  ;;  %791 = vst.msk [vmem:[%s532_s27] sm:$0xf] %vm790_vm2, %v776_v43  ;;  %v1183_v57 = vpack.i.b16 %v1171_v46, %v2473_v19  ;;  %s1284_s14 = scalar_lea.sflag [#allocation4], %s2381_s3  ;;  %s2564_s24 = int_to_ptr.vmem [resolvable:$true] %s1308_s24 }
 0x244   : > { %v1180_v56 = vcombine.high %v1178_v50, %v2068_v54  ;;  %v1186_v58 = vshrl.u32 %v1171_v46, 16  ;;  %v1199_v59 = vpack.i.b16 %v1178_v50, %v2476_v20  ;;  %v1202_v0 = vshrl.u32 %v1178_v50, 16  ;;  %793 = vst.msk [vmem:[%s532_s27 + $0x8] sm:$0xf] %vm790_vm2, %v784_v52  ;;  %s1930_s30 = scalar_lea.vmem %s2564_s24, 256  ;;  %s2072_s17 = smov [#allocation11]  }
 0x245   : > { %v788_v60 = vpack.i.b16 %v787_v53, %v786_v47  ;;  %v1191_v61 = vpack.i.b16 %v1179_v55, %v2503_v33  ;;  %v1194_v62 = vshrl.u32 %v1179_v55, 16  ;;  %792 = vst.msk [vmem:[%s532_s27 + $0x4] sm:$0xf] %vm790_vm2, %v780_v51  ;;  %p1931_p11 = scmp.ne.s32.totalorder %s2564_s24, %s1930_s30  ;;  %s1934_s23 = sshll.u32 %s2072_s17, 4  ;;  %s1935_s23 = int_to_ptr.vmem [resolvable:$false] %s1934_s23 }
 0x246   : > { %v1187_v1 = vpack.i.b16 %v1186_v58, %v1185_v39  ;;  %v1207_v2 = vpack.i.b16 %v1180_v56, %v2507_v34  ;;  %v1210_v3 = vshrl.u32 %v1180_v56, 16  ;;  %v1213_v4 = vcombine.low %v1183_v57, %v1199_v59  ;;  %s1936_s11 = scalar_lea.vmem %s1935_s23, 512  ;;  %p1937_p8 = scmp.lt.s32.totalorder %s2564_s24, %s1935_s23 }
 0x247   : > { %v1195_v5 = vpack.i.b16 %v1194_v62, %v1193_v48  ;;  %v1203_v6 = vpack.i.b16 %v1202_v0, %v1201_v41  ;;  %794 = vst.msk [vmem:[%s532_s27 + $0xc] sm:$0xf] %vm790_vm2, %v788_v60  ;;  %p1932_p10 = pnand %p1931_p11, %p2740_p4  ;;  %p1938_p0 = scmp.lt.s32.totalorder %s1936_s11, %s1930_s30 }
 0x248   : > { %s2562_s22 = scalar_lea.hbm %s2741_s16, %s2479_s9  ;;  %v1211_v7 = vpack.i.b16 %v1210_v3, %v1209_v49  ;;  %v1221_v8 = vcombine.low %v1191_v61, %v1207_v2 }
 0x249   : > { %p1933_p6 = pneg %p1932_p10  ;;  %p1939_p5 = por %p1938_p0, %p1937_p8 }
 0x24b   : > { %p1940_p12 = pnand %p1939_p5, %p1933_p6 }
 0x24d   : > { %1943 = shalt.err (!%p1940_p12)
}
 0x24e   : > { %s1944_s28 = scalar_lea.hbm %s2562_s22, 256  ;;  %s1948_s26 = scalar_lea.hbm %s2741_s16, 512 }
 0x24f   : > { %p1945_p7 = scmp.ne.s32.totalorder %s2562_s22, %s1944_s28  ;;  %p1949_p2 = scmp.lt.u32.totalorder %s2562_s22, %s2741_s16 }
 0x250   : > { %p1950_p1 = scmp.lt.u32.totalorder %s1948_s26, %s1944_s28  ;;  %p1952_p11 = scmp.lt.u32.totalorder %s1944_s28, %s2562_s22 }
 0x251   : > { %p1946_p13 = pnand %p1945_p7, %p2740_p4 }
 0x252   : > { %p1951_p3 = por %p1950_p1, %p1949_p2 }
 0x253   : > { %p1947_p9 = pneg %p1946_p13 }
 0x254   : > { %p1953_p10 = por %p1952_p11, %p1951_p3 }
 0x256   : > { %p1954_p6 = pnand %p1953_p10, %p1947_p9 }
 0x258   : > { %1957 = shalt.err (!%p1954_p6)
}
 0x259   : > { %1649 = dma.vmem_to_hbm [thread:$0]  (%p2740_p4), %s2564_s24, 256, %s2562_s22, %s1284_s14, %s2070_s13, %s2070_s13, %s2071_s21   ;;  %v1238_v9 = vcombine.low %v1187_v1, %v1203_v6  ;;  %v1220_v10 = vrot.slane %v1213_v4, %v2425_v40  ;;  %v1228_v11 = vrot.slane %v1221_v8, %v2425_v40  ;;  %v1246_v12 = vcombine.low %v1195_v5, %v1211_v7 }
 0x25a   : > { %s546_s3 = scalar_lea.vmem [#allocation14], %s2463_s7  ;;  %s2742_s14 = sld [smem:[#allocation31_spill]] }
 0x25b   : > { %v1229_v13 = vcombine.low %v1220_v10, %v1228_v11  ;;  %v1245_v14 = vrot.slane %v1238_v9, %v2425_v40  ;;  %v1253_v15 = vrot.slane %v1246_v12, %v2425_v40  ;;  %s1342_s24 = sshll.u32 %s546_s3, 4  ;;  %s2073_s17 = smov [#allocation14]   ;;  %s2613_s24 = int_to_ptr.vmem [resolvable:$true] %s1342_s24 }
 0x25c   : > { %s1958_s7 = scalar_lea.vmem %s2613_s24, 256  ;;  %s1962_s23 = sshll.u32 %s2073_s17, 4  ;;  %s1963_s23 = int_to_ptr.vmem [resolvable:$false] %s1962_s23 }
 0x25d   : > { %v1236_v16 = vrot.slane %v1229_v13, %v2428_v44  ;;  %v1254_v17 = vcombine.low %v1245_v14, %v1253_v15  ;;  %p1959_p8 = scmp.ne.s32.totalorder %s2613_s24, %s1958_s7  ;;  %s1964_s11 = scalar_lea.vmem %s1963_s23, 512 }
 0x25e   : > { %p1965_p12 = scmp.lt.s32.totalorder %s2613_s24, %s1963_s23  ;;  %p1966_p7 = scmp.lt.s32.totalorder %s1964_s11, %s1958_s7 }
 0x25f   : > { %v1237_v18 = vcombine.high %v1236_v16, %v2068_v54  ;;  %v1261_v19 = vrot.slane %v1254_v17, %v2428_v44  ;;  %v1267_v21 = vshrl.u32 %v1236_v16, 16  ;;  %p1960_p0 = pnand %p1959_p8, %p2740_p4 }
 0x260   : > { %s2611_s30 = scalar_lea.hbm %s2742_s14, %s2479_s9  ;;  %p1967_p13 = por %p1966_p7, %p1965_p12 }
 0x261   : > { %v1262_v20 = vcombine.high %v1261_v19, %v2068_v54  ;;  %v1265_v63 = vpack.i.b16 %v1261_v19, %v1236_v16  ;;  %v1268_v22 = vshrl.u32 %v1261_v19, 16  ;;  %v1275_v25 = vshrl.u32 %v1237_v18, 16  ;;  %p1961_p5 = pneg %p1960_p0 }
 0x263   : > { %v1269_v23 = vpack.i.b16 %v1268_v22, %v1267_v21  ;;  %v1273_v24 = vpack.i.b16 %v1262_v20, %v1237_v18  ;;  %v1276_v40 = vshrl.u32 %v1262_v20, 16  ;;  %1279 = vst.msk [vmem:[%s546_s3] sm:$0xf] %vm790_vm2, %v1265_v63  ;;  %p1968_p9 = pnand %p1967_p13, %p1961_p5 }
 0x265   : > { %v1277_v26 = vpack.i.b16 %v1276_v40, %v1275_v25  ;;  %1280 = vst.msk [vmem:[%s546_s3 + $0x4] sm:$0xf] %vm790_vm2, %v1269_v23  ;;  %1281 = vst.msk [vmem:[%s546_s3 + $0x8] sm:$0xf] %vm790_vm2, %v1273_v24 }
 0x267   : > { %1282 = vst.msk [vmem:[%s546_s3 + $0xc] sm:$0xf] %vm790_vm2, %v1277_v26 }
 0x268   : > { %1971 = shalt.err (!%p1968_p9)
}
 0x269   : > { %s1972_s9 = scalar_lea.hbm %s2611_s30, 256  ;;  %s1976_s12 = scalar_lea.hbm %s2742_s14, 512 }
 0x26a   : > { %p1973_p2 = scmp.ne.s32.totalorder %s2611_s30, %s1972_s9  ;;  %p1977_p11 = scmp.lt.u32.totalorder %s2611_s30, %s2742_s14 }
 0x26b   : > { %p1978_p10 = scmp.lt.u32.totalorder %s1976_s12, %s1972_s9  ;;  %p1980_p8 = scmp.lt.u32.totalorder %s1972_s9, %s2611_s30 }
 0x26c   : > { %p1974_p1 = pnand %p1973_p2, %p2740_p4 }
 0x26d   : > { %p1979_p6 = por %p1978_p10, %p1977_p11 }
 0x26e   : > { %p1975_p3 = pneg %p1974_p1 }
 0x26f   : > { %p1981_p0 = por %p1980_p8, %p1979_p6 }
 0x271   : > { %p1982_p5 = pnand %p1981_p0, %p1975_p3 }
 0x273   : > { %1985 = shalt.err (!%p1982_p5)
}
 0x274   : > { %1651 = dma.vmem_to_hbm [thread:$0]  (%p2740_p4), %s2613_s24, 256, %s2611_s30, %s2513_s25, %s2070_s13, %s2070_s13, %s2071_s21  }
 0x275 PF: > { %s2743_s20 = sld [smem:[#allocation20_spill]]  ;;  %s2744_s3 = sld [smem:[#allocation23_spill]] }
 0x276   : > { %s2745_s15 = sld [smem:[#allocation22_spill]] }
 0x27b   : > { %s1357_s22 = sand.u32 1, %s2743_s20   ;;  %p2746_p12 = scmp.ne.s32.totalorder %s2744_s3, 0 }
 0x27c   : > { %p2747_p7 = scmp.ge.s32.totalorder %s2745_s15, 2  ;;  %s1358_s7 = scalar_lea.sflag [#allocation4], %s1357_s22 }
 0x27e   : > { %p1673_p13 = pnand %p2747_p7, %p2746_p12 }
 0x280   : > { %2023 = dma.done.wait (!%p1673_p13), %s1358_s7, 256  }
 0x281   : > { %2025 = vsyncadd (!%p1673_p13), %s1358_s7, 4294967040  ;;  %s2748_s1 = sadd.s32 4294967294, %s2745_s15  }
 0x282   : > { %s1366_s17 = sand.u32 1, %s2748_s1  }
 0x283   : > { %s1367_s23 = scalar_lea.sflag [#allocation13], %s1366_s17 }
 0x284   : > { %2027 = dma.done.wait (!%p1673_p13), %s1367_s23, 512  }
 0x285   : > { %2029 = vsyncadd (!%p1673_p13), %s1367_s23, 4294966784  ;;  %s35_s22 = sadd.s32 1, %s2745_s15   ;;  %s2749_s25 = sld [smem:[#allocation26_spill]] }
 0x286   : > { %p32_p4 = scmp.ge.s32.totalorder %s35_s22, 4   ;;  %s2750_s20 = sld [smem:[#allocation21_spill]] }
 0x287   : > { %s2751_s21 = sld [smem:[#allocation24_spill]]  ;;  %s2752_s17 = smov %s2036_s18 }
 0x288   : > { %s2753_s18 = smov %s2040_s19  ;;  %34 = sbr.rel (!%p32_p4) target bundleno = 17 (0x11), region = 165 }
 0x28b   : > { %s2754_s19 = smov %s2749_s25 }
 0x28f   :  { %1381 = vsyncpa [#allocation3], 1 }
 0x290   :  { %1383 = vsyncpa [#allocation3 + $0x1], 1 }
 0x291   :  { %1384 = vsyncpa [#allocation6], 1 }
 0x292   :  { %1386 = vsyncpa [#allocation6 + $0x1], 1 }
 0x293   :  { %1387 = vsyncpa [#allocation9], 1 }
 0x294   :  { %1388 = vsyncpa [#allocation4], 1 }
 0x295   :  { %1390 = vsyncpa [#allocation4 + $0x1], 1 }
 0x296   :  { %1391 = vsyncpa [#allocation13], 1 }
 0x297   :  { %1393 = vsyncpa [#allocation13 + $0x1], 1 }

</bundles_post_ra>
